<compile_context>
chip_gen: v7x
topology: tpu7x:2x2x1
jax: 0.10.0
libtpu: 0.0.40
codegen_flags: <defaults>
</compile_context>

<pallas_src>
import jax
import jax.numpy as jnp
from jax.experimental import pallas as pl
from jax.experimental.pallas import tpu as pltpu

LATENT_DIM = 8
COND_DIM = 2
IN_DIM = LATENT_DIM + COND_DIM   # 10
IN_PAD = 16                      # pad features to the bf16 sublane tile (16)
H1 = 32
H2 = 64
OUT_DIM = 4

LANE = 128
TB_MAX = 16384                   # per-tile VMEM ~12 MiB incl. temporaries -> fits v7x 64 MiB


def _round_up(x, m):
    return (x + m - 1) // m * m


def _choose_tiling(B):
    """Pick (tile, padded_batch, steps): minimal padding, >=2 steps when possible."""
    steps = max(pl.cdiv(B, TB_MAX), 1)
    if steps == 1 and B > LANE:
        steps = 2                          # let v7x shard the batch over both TCs
    tb = _round_up(pl.cdiv(B, steps), LANE)
    if tb >= 256:
        tb = _round_up(tb, 256)            # full 256-wide MXU tiles on v6e/v7x
    return tb, tb * steps, steps


def _decoder_mlp_kernel(x_ref, w1_ref, b1_ref, w2_ref, b2_ref, w3_ref, b3_ref,
                        o_ref):
    # Feature-major tiles: x [16, TB] bf16 (rows 10..15 are zero), out [4, TB] f32.
    x = x_ref[...]

    # Layer 1: Linear(10 -> 32) + ReLU (padded feature rows hit zero W1 cols).
    h = jnp.dot(w1_ref[...], x, preferred_element_type=jnp.float32) + b1_ref[...]
    h = jnp.maximum(h, 0.0).astype(jnp.bfloat16)        # [32, TB]

    # Layer 2: Linear(32 -> 64) + ReLU.
    h = jnp.dot(w2_ref[...], h, preferred_element_type=jnp.float32) + b2_ref[...]
    h = jnp.maximum(h, 0.0).astype(jnp.bfloat16)        # [64, TB]

    # Layer 3: Linear(64 -> 4), no activation.  Lane-dense [4, TB] store.
    o = jnp.dot(w3_ref[...], h, preferred_element_type=jnp.float32) + b3_ref[...]
    o_ref[...] = o.astype(o_ref.dtype)


@jax.jit
def decoder_forward(z, cond, params):
    """Pallas-backed equivalent of Decoder.forward(z, cond) -> [B, 4] f32."""
    assert z.ndim == 2 and cond.ndim == 2
    assert z.shape[1] == LATENT_DIM and cond.shape[1] == COND_DIM
    assert z.shape[0] == cond.shape[0]
    w1, b1, w2, b2, w3, b3 = params

    B = z.shape[0]
    tb, bp, steps = _choose_tiling(B)

    # Single fusible pre-processing op: concat + pad (batch and feature dims)
    # + transpose + bf16 cast -> feature-major [16, Bp] MXU operand.
    zc = jnp.concatenate([z, cond], axis=1)                          # [B, 10]
    x = jnp.pad(zc, ((0, bp - B), (0, IN_PAD - IN_DIM))).T.astype(jnp.bfloat16)

    macs = H1 * IN_PAD + H2 * H1 + OUT_DIM * H2                      # per batch elem
    cost = pl.CostEstimate(
        flops=2 * macs * bp,
        transcendentals=0,
        bytes_accessed=bp * (IN_PAD * 2 + OUT_DIM * 4) + macs * 2
        + (H1 + H2 + OUT_DIM) * 4,
    )

    out_fm = pl.pallas_call(
        _decoder_mlp_kernel,
        out_shape=jax.ShapeDtypeStruct((OUT_DIM, bp), jnp.float32),
        grid=(steps,),
        in_specs=[
            # batch-tiled merged activation
            pl.BlockSpec((IN_PAD, tb), lambda i: (0, i)),
            # VMEM-resident weights / biases (constant index_map)
            pl.BlockSpec((H1, IN_PAD), lambda i: (0, 0)),
            pl.BlockSpec((H1, 1), lambda i: (0, 0)),
            pl.BlockSpec((H2, H1), lambda i: (0, 0)),
            pl.BlockSpec((H2, 1), lambda i: (0, 0)),
            pl.BlockSpec((OUT_DIM, H2), lambda i: (0, 0)),
            pl.BlockSpec((OUT_DIM, 1), lambda i: (0, 0)),
        ],
        out_specs=pl.BlockSpec((OUT_DIM, tb), lambda i: (0, i)),
        compiler_params=pltpu.CompilerParams(
            dimension_semantics=("parallel",),
            vmem_limit_bytes=48 * 1024 * 1024,
            allow_input_fusion=[True, False, False, False, False, False, False],
        ),
        cost_estimate=cost,
    )(x, w1, b1, w2, b2, w3, b3)

    # Back to the PyTorch [B, 4] convention (tiny op; a feature-major consumer
    # can use out_fm[:, :B] directly and skip this transpose).
    return out_fm[:, :B].T


def init_decoder_params(key):
    """nn.Linear-style init (U[-1/sqrt(fan_in), 1/sqrt(fan_in)]).

    Weights kept in PyTorch [out, in] layout (feature-major kernel wants them
    this way), stored as bf16; biases stored f32 with shape [out, 1].
    W1 is zero-padded along its input dim from 10 to 16 to match the padded
    feature-major input (the extra columns multiply zero rows).
    """
    ks = jax.random.split(key, 6)

    def linear(kw, kb, fan_in, fan_out):
        bound = 1.0 / (fan_in ** 0.5)
        w = jax.random.uniform(kw, (fan_out, fan_in), jnp.float32, -bound, bound)
        b = jax.random.uniform(kb, (fan_out, 1), jnp.float32, -bound, bound)
        return w, b

    w1, b1 = linear(ks[0], ks[1], IN_DIM, H1)
    w2, b2 = linear(ks[2], ks[3], H1, H2)
    w3, b3 = linear(ks[4], ks[5], H2, OUT_DIM)
    w1p = jnp.pad(w1, ((0, 0), (0, IN_PAD - IN_DIM)))     # zero cols for pad rows
    return (w1p.astype(jnp.bfloat16), b1,
            w2.astype(jnp.bfloat16), b2,
            w3.astype(jnp.bfloat16), b3)


def decoder_reference(z, cond, params):
    """Pure-JAX f32 reference for correctness checking."""
    w1p, b1, w2, b2, w3, b3 = [p.astype(jnp.float32) for p in params]
    w1 = w1p[:, :IN_DIM]
    zc = jnp.concatenate([z, cond], axis=1)
    h = jnp.maximum(zc @ w1.T + b1[:, 0], 0.0)
    h = jnp.maximum(h @ w2.T + b2[:, 0], 0.0)
    return h @ w3.T + b3[:, 0]


if __name__ == "__main__":
    key = jax.random.PRNGKey(0)
    kp, kz, kc = jax.random.split(key, 3)

    B = 64  # small demo batch; wrapper pads to the 128-lane tile internally
    params = init_decoder_params(kp)
    z = jax.random.normal(kz, (B, LATENT_DIM), jnp.float32)
    cond = jax.random.normal(kc, (B, COND_DIM), jnp.float32)

    out = jax.block_until_ready(decoder_forward(z, cond, params))
    ref = decoder_reference(z, cond, params)

    assert out.shape == (B, OUT_DIM), out.shape
    # bf16 MXU operands with f32 accumulation -> loosened tolerance vs f32 ref.
    assert jnp.allclose(out, ref, atol=5e-2, rtol=5e-2), "mismatch vs reference"

    print("KERNEL_OK")
</pallas_src>

<mosaic_0001>
module attributes {stable_mosaic.version = 11 : i64} {
  func.func @_decoder_mlp_kernel(%arg0: i32, %arg1: memref<16x128xbf16, #tpu.memory_space<vmem>>, %arg2: memref<32x16xbf16, #tpu.memory_space<vmem>>, %arg3: memref<32x1xf32, #tpu.memory_space<vmem>>, %arg4: memref<64x32xbf16, #tpu.memory_space<vmem>>, %arg5: memref<64x1xf32, #tpu.memory_space<vmem>>, %arg6: memref<4x64xbf16, #tpu.memory_space<vmem>>, %arg7: memref<4x1xf32, #tpu.memory_space<vmem>>, %arg8: memref<4x128xf32, #tpu.memory_space<vmem>>) attributes {dimension_semantics = [#tpu.dimension_semantics<parallel>], iteration_bounds = array<i64: 1>, scalar_prefetch = 0 : i64, scratch_operands = 0 : i64, tpu.core_type = #tpu.core_type<tc>, window_params = [{transform_indices = @transform_0, window_bounds = array<i64: 16, 128>}, {pipeline_mode = #tpu.pipeline_mode<synchronous>, transform_indices = @transform_1, window_bounds = array<i64: 32, 16>}, {pipeline_mode = #tpu.pipeline_mode<synchronous>, transform_indices = @transform_2, window_bounds = array<i64: 32, 1>}, {pipeline_mode = #tpu.pipeline_mode<synchronous>, transform_indices = @transform_3, window_bounds = array<i64: 64, 32>}, {pipeline_mode = #tpu.pipeline_mode<synchronous>, transform_indices = @transform_4, window_bounds = array<i64: 64, 1>}, {pipeline_mode = #tpu.pipeline_mode<synchronous>, transform_indices = @transform_5, window_bounds = array<i64: 4, 64>}, {pipeline_mode = #tpu.pipeline_mode<synchronous>, transform_indices = @transform_6, window_bounds = array<i64: 4, 1>}, {transform_indices = @transform_7, window_bounds = array<i64: 4, 128>}]} {
    %c0 = arith.constant 0 : index
    %c0_0 = arith.constant 0 : index
    %0 = vector.load %arg1[%c0, %c0_0] : memref<16x128xbf16, #tpu.memory_space<vmem>>, vector<16x128xbf16>
    %c0_1 = arith.constant 0 : index
    %c0_2 = arith.constant 0 : index
    %1 = vector.load %arg2[%c0_1, %c0_2] : memref<32x16xbf16, #tpu.memory_space<vmem>>, vector<32x16xbf16>
    %cst = arith.constant dense<0.000000e+00> : vector<32x128xf32>
    %2 = tpu.matmul %1, %0, %cst {dimension_numbers = #tpu.dot_dimension_numbers<[1], [0], [0], [1], [0, 0, 1, 1], [], []>} : vector<32x16xbf16>, vector<16x128xbf16>, vector<32x128xf32> -> vector<32x128xf32>
    %c0_3 = arith.constant 0 : index
    %c0_4 = arith.constant 0 : index
    %3 = vector.load %arg3[%c0_3, %c0_4] : memref<32x1xf32, #tpu.memory_space<vmem>>, vector<32x1xf32>
    %4 = vector.broadcast %3 : vector<32x1xf32> to vector<32x128xf32>
    %5 = arith.addf %2, %4 : vector<32x128xf32>
    %cst_5 = arith.constant 0.000000e+00 : f32
    %6 = vector.broadcast %cst_5 : f32 to vector<32x128xf32>
    %7 = arith.maximumf %5, %6 : vector<32x128xf32>
    %8 = arith.truncf %7 : vector<32x128xf32> to vector<32x128xbf16>
    %c0_6 = arith.constant 0 : index
    %c0_7 = arith.constant 0 : index
    %9 = vector.load %arg4[%c0_6, %c0_7] : memref<64x32xbf16, #tpu.memory_space<vmem>>, vector<64x32xbf16>
    %cst_8 = arith.constant dense<0.000000e+00> : vector<64x128xf32>
    %10 = tpu.matmul %9, %8, %cst_8 {dimension_numbers = #tpu.dot_dimension_numbers<[1], [0], [0], [1], [0, 0, 1, 1], [], []>} : vector<64x32xbf16>, vector<32x128xbf16>, vector<64x128xf32> -> vector<64x128xf32>
    %c0_9 = arith.constant 0 : index
    %c0_10 = arith.constant 0 : index
    %11 = vector.load %arg5[%c0_9, %c0_10] : memref<64x1xf32, #tpu.memory_space<vmem>>, vector<64x1xf32>
    %12 = vector.broadcast %11 : vector<64x1xf32> to vector<64x128xf32>
    %13 = arith.addf %10, %12 : vector<64x128xf32>
    %cst_11 = arith.constant 0.000000e+00 : f32
    %14 = vector.broadcast %cst_11 : f32 to vector<64x128xf32>
    %15 = arith.maximumf %13, %14 : vector<64x128xf32>
    %16 = arith.truncf %15 : vector<64x128xf32> to vector<64x128xbf16>
    %c0_12 = arith.constant 0 : index
    %c0_13 = arith.constant 0 : index
    %17 = vector.load %arg6[%c0_12, %c0_13] : memref<4x64xbf16, #tpu.memory_space<vmem>>, vector<4x64xbf16>
    %cst_14 = arith.constant dense<0.000000e+00> : vector<4x128xf32>
    %18 = tpu.matmul %17, %16, %cst_14 {dimension_numbers = #tpu.dot_dimension_numbers<[1], [0], [0], [1], [0, 0, 1, 1], [], []>} : vector<4x64xbf16>, vector<64x128xbf16>, vector<4x128xf32> -> vector<4x128xf32>
    %c0_15 = arith.constant 0 : index
    %c0_16 = arith.constant 0 : index
    %19 = vector.load %arg7[%c0_15, %c0_16] : memref<4x1xf32, #tpu.memory_space<vmem>>, vector<4x1xf32>
    %20 = vector.broadcast %19 : vector<4x1xf32> to vector<4x128xf32>
    %21 = arith.addf %18, %20 : vector<4x128xf32>
    %c0_17 = arith.constant 0 : index
    %c0_18 = arith.constant 0 : index
    %22 = vector.load %arg8[%c0_17, %c0_18] : memref<4x128xf32, #tpu.memory_space<vmem>>, vector<4x128xf32>
    tpu.vector_store %arg8[%c0_17, %c0_18], %21 {strides = array<i32>} : memref<4x128xf32, #tpu.memory_space<vmem>>, vector<4x128xf32>,
    return
  }
  func.func @transform_0(%arg0: i32) -> (i32, i32) {
    %c0_i32 = arith.constant 0 : i32
    %c0_i32_0 = arith.constant 0 : i32
    return %c0_i32, %arg0 : i32, i32
  }
  func.func @transform_1(%arg0: i32) -> (i32, i32) {
    %c0_i32 = arith.constant 0 : i32
    %c0_i32_0 = arith.constant 0 : i32
    %c0_i32_1 = arith.constant 0 : i32
    return %c0_i32, %c0_i32_0 : i32, i32
  }
  func.func @transform_2(%arg0: i32) -> (i32, i32) {
    %c0_i32 = arith.constant 0 : i32
    %c0_i32_0 = arith.constant 0 : i32
    %c0_i32_1 = arith.constant 0 : i32
    return %c0_i32, %c0_i32_0 : i32, i32
  }
  func.func @transform_3(%arg0: i32) -> (i32, i32) {
    %c0_i32 = arith.constant 0 : i32
    %c0_i32_0 = arith.constant 0 : i32
    %c0_i32_1 = arith.constant 0 : i32
    return %c0_i32, %c0_i32_0 : i32, i32
  }
  func.func @transform_4(%arg0: i32) -> (i32, i32) {
    %c0_i32 = arith.constant 0 : i32
    %c0_i32_0 = arith.constant 0 : i32
    %c0_i32_1 = arith.constant 0 : i32
    return %c0_i32, %c0_i32_0 : i32, i32
  }
  func.func @transform_5(%arg0: i32) -> (i32, i32) {
    %c0_i32 = arith.constant 0 : i32
    %c0_i32_0 = arith.constant 0 : i32
    %c0_i32_1 = arith.constant 0 : i32
    return %c0_i32, %c0_i32_0 : i32, i32
  }
  func.func @transform_6(%arg0: i32) -> (i32, i32) {
    %c0_i32 = arith.constant 0 : i32
    %c0_i32_0 = arith.constant 0 : i32
    %c0_i32_1 = arith.constant 0 : i32
    return %c0_i32, %c0_i32_0 : i32, i32
  }
  func.func @transform_7(%arg0: i32) -> (i32, i32) {
    %c0_i32 = arith.constant 0 : i32
    %c0_i32_0 = arith.constant 0 : i32
    return %c0_i32, %arg0 : i32, i32
  }
}

</mosaic_0001>

<bundles_post_ra>
// kernel: decoder_forward.2
= control target key start
LH: loop header
LB: loop body
LE: loop exit
PB: predicated region body
PF: predicated region fallthrough
CT: control target
= control target key end

     0   :  { %s798_s0 = inlined_call_operand.vmem [shape: bf16[32,16], index: 0, kind: input, shape index: {}]   ;;  %s799_s1 = inlined_call_operand.vmem [shape: f32[32,1], index: 1, kind: input, shape index: {}]   ;;  %s800_s2 = inlined_call_operand.vmem [shape: bf16[64,32], index: 2, kind: input, shape index: {}]   ;;  %s801_s3 = inlined_call_operand.vmem [shape: f32[64,1], index: 3, kind: input, shape index: {}]   ;;  %s802_s4 = inlined_call_operand.vmem [shape: bf16[4,64], index: 4, kind: input, shape index: {}]   ;;  %s803_s5 = inlined_call_operand.vmem [shape: f32[4,1], index: 5, kind: input, shape index: {}]   ;;  %s804_s6 = inlined_call_operand.vmem [shape: bf16[64,2], index: 6, kind: input, shape index: {}]   ;;  %s805_s7 = inlined_call_operand.<no memory space> [shape: bf16[], index: 7, kind: input, shape index: {}]   ;;  %s806_s8 = inlined_call_operand.<no memory space> [shape: s32[], index: 8, kind: input, shape index: {}]   ;;  %s807_s9 = inlined_call_operand.<no memory space> [shape: s32[], index: 9, kind: input, shape index: {}]   ;;  %s808_s10 = inlined_call_operand.vmem [shape: bf16[64,8], index: 10, kind: input, shape index: {}]   ;;  %s809_s11 = inlined_call_operand.<no memory space> [shape: bf16[], index: 11, kind: input, shape index: {}]   ;;  %s810_s12 = inlined_call_operand.vmem [shape: f32[4,128], index: 12, kind: output, shape index: {}]  }
   0x1   :  { %v17_v0 = vstv %s805_s7  ;;  %v22_v1 = vstv %s806_s8  ;;  %v23_v2 = vstv %s807_s9  ;;  %v29_v3 = vstv %s809_s11 }
   0x2   :  { %v18_v4 = vunpack.i.l.bf16 %v17_v0  ;;  %v30_v5 = vunpack.i.l.bf16 %v29_v3 }
   0x3   :  { %v81_v6 = vld [vmem:[%s804_s6] sm:$0x1]  ;;  %v96_v8 = vlaneseq  ;;  %vm247_vm0 = vcmask 130048   ;;  %v209_v15 = vld [vmem:[%s799_s1 + $0x10] sm:$0xff]  ;;  %v608_v19 = vmov 0   ;;  %v208_v25 = vld [vmem:[%s799_s1 + $0x8] sm:$0xff] }
   0x4   :  { %v93_v7 = vld [vmem:[%s808_s10] sm:$0xf]  ;;  %v82_v13 = vunpack.c.l.bf16 %v81_v6  ;;  %599 = vset.pattern.permute.xlu0 %v608_v19  ;;  %600 = vset.pattern.permute.xlu1 %v608_v19  ;;  %v210_v26 = vld [vmem:[%s799_s1 + $0x18] sm:$0xff]  ;;  %v609_v34 = vmov 0.0   ;;  %v318_v37 = vld [vmem:[%s801_s3 + $0x8] sm:$0xff]  ;;  %vm385_vm8 = vcmask 261120  }
   0x5   :  { %v602_v9 = vld [vmem:[%s798_s0] sm:$0xff]   ;;  %v94_v10 = vunpack.c.l.bf16 %v93_v7  ;;  %v97_v11 = vand.u32 127, %v96_v8  ;;  %v111_v12 = vshrl.u32 %v96_v8, 7  ;;  %223 = vperm.xlu1 %600, %v209_v15   ;;  %v319_v40 = vld [vmem:[%s801_s3 + $0x10] sm:$0xff]  ;;  %v320_v41 = vld [vmem:[%s801_s3 + $0x18] sm:$0xff]  ;;  %vm610_vm9 = vmmov 0  }
   0x6   :  { %568 = vmatprep.mubr.msk.bf16.mxu0 %vm247_vm0, %v602_v9  ;;  %v207_v14 = vld [vmem:[%s799_s1] sm:$0xff]  ;;  %v322_v43 = vld [vmem:[%s801_s3 + $0x28] sm:$0xff]  ;;  %v323_v45 = vld [vmem:[%s801_s3 + $0x30] sm:$0xff]  ;;  %vm482_vm10 = vcmask 523264  }
   0x7   :  { %vm99_vm1 = vcmp.lt.s32.totalorder %v97_v11, 64  ;;  %vm704_vm2 = vcmp.lt.s32.totalorder %v97_v11, %v23_v2  ;;  %vm708_vm3 = vcmp.lt.s32.totalorder %v111_v12, %v22_v1  ;;  %v147_v18 = vadd.s32 8, %v111_v12  ;;  %213 = vperm.xlu0 %599, %v207_v14   ;;  %v317_v32 = vld [vmem:[%s801_s3] sm:$0xff]  ;;  %v324_v46 = vld [vmem:[%s801_s3 + $0x38] sm:$0xff]  ;;  %v603_v47 = vld [vmem:[%s798_s0 + $0x8] sm:$0xff]  }
   0x8   :  { %v100_v20 = vsel %vm99_vm1, %v94_v10, %v18_v4  ;;  %vm534_vm4 = vmand %vm704_vm2, %vm708_vm3  ;;  %v131_v21 = vsel %vm704_vm2, %v18_v4, %v30_v5  ;;  %v321_v42 = vld [vmem:[%s801_s3 + $0x20] sm:$0xff]  ;;  %v607_v6 = vld [vmem:[%s800_s2 + $0x18] sm:$0xff]  }
   0x9   :  { %v122_v22 = vsel %vm704_vm2, %v100_v20, %v30_v5  ;;  %v136_v23 = vsel %vm534_vm4, %v131_v21, %v30_v5  ;;  %vm148_vm5 = vcmp.lt.s32.totalorder %v147_v18, 10  ;;  %vm721_vm6 = vcmp.lt.s32.totalorder %v147_v18, %v22_v1  ;;  %228 = vperm.xlu1 %600, %v210_v26   ;;  %v476_v48 = vld [vmem:[%s803_s5] sm:$0xf] }
   0xa   :  { %v127_v27 = vsel %vm534_vm4, %v122_v22, %v30_v5  ;;  %v149_v28 = vsel %vm148_vm5, %v82_v13, %v18_v4  ;;  %vm536_vm7 = vmand %vm704_vm2, %vm721_vm6  ;;  %v604_v49 = vld [vmem:[%s800_s2] sm:$0xff]  }
   0xb   :  { %v140_v29 = vmax.f32 %v127_v27, %v136_v23  ;;  %v154_v30 = vsel %vm99_vm1, %v149_v28, %v18_v4  ;;  %v181_v31 = vsel %vm536_vm7, %v131_v21, %v30_v5  ;;  %218 = vperm.xlu0 %599, %v208_v25   ;;  %576 = vmatprep.mubr.msk.bf16.mxu1 %vm385_vm8, %v604_v49  ;;  %v605_v4 = vld [vmem:[%s800_s2 + $0x8] sm:$0xff]  }
   0xc   :  { %v185_v33 = vsel %vm704_vm2, %v154_v30, %v30_v5 }
   0xd   :  { %v142_v35 = vpack.c.bf16 %v609_v34, %v140_v29  ;;  %v190_v36 = vsel %vm536_vm7, %v185_v33, %v30_v5  ;;  %332 = vperm.xlu1 %600, %v318_v37   ;;  %v606_v5 = vld [vmem:[%s800_s2 + $0x10] sm:$0xff]  }
   0xe   :  { %v194_v38 = vmax.f32 %v181_v31, %v190_v36 }
   0xf   :  { %144 = vst [vmem:[#allocation12] sm:$0xf] %v142_v35  ;;  %327 = vperm.xlu0 %599, %v317_v32  }
  0x10   :  { %v197_v39 = vpack.c.bf16 %v609_v34, %v194_v38 }
  0x11   :  { %342 = vperm.xlu1 %600, %v320_v41  }
  0x12   :  { %199 = vst [vmem:[#allocation12 + $0x4] sm:$0xf] %v197_v39 }
  0x13   :  { %337 = vperm.xlu0 %599, %v319_v40  }
  0x15   :  { %352 = vperm.xlu1 %600, %v322_v43  }
  0x17   :  { %347 = vperm.xlu0 %599, %v321_v42  }
  0x19   :  { %v601_v44 = vld [vmem:[#allocation12] sm:$0xff]   ;;  %362 = vperm.xlu1 %600, %v324_v46  }
  0x1a   :  { %566 = vmatprep.subr.bf16.mxu0 %v601_v44 }
  0x1b   :  { %567 = vmatpush3.bf16.msra.mxu0 %v601_v44  ;;  %357 = vperm.xlu0 %599, %v323_v45   ;;  %v475_v44 = vld [vmem:[%s802_s4] sm:$0x3] }
  0x1c   :  { %584 = vmatprep.subr.bf16.mxu0 %v609_v34 }
  0x1e   :  { %569 = vmatmul.mubr.msk.bf16.vlgmr.msra.gmra.mrb[0].mxu0 %vm247_vm0, %v603_v47 }
  0x1f   :  { %479 = vperm.xlu0 %599, %v476_v48   ;;  %592 = vmatprep.mubr.msk.bf16.mxu0 %vm610_vm9, %v609_v34 }
  0x84   :  { %v224_v50 = vpop.permute.xlu1 %223 }
  0x86   :  { %v214_v51 = vpop.permute.xlu0 %213 }
  0x88   :  { %v229_v55 = vpop.permute.xlu1 %228 }
  0x8a   :  { %v219_v58 = vpop.permute.xlu0 %218 }
  0x8c   :  { %v333_v8 = vpop.permute.xlu1 %332 }
  0x8e   :  { %v328_v7 = vpop.permute.xlu0 %327 }
  0x90   :  { %v343_v10 = vpop.permute.xlu1 %342 }
  0x92   :  { %v338_v9 = vpop.permute.xlu0 %337 }
  0x94   :  { %v353_v19 = vpop.permute.xlu1 %352 }
  0x96   :  { %v348_v14 = vpop.permute.xlu0 %347 }
  0x98   :  { %v363_v31 = vpop.permute.xlu1 %362 }
  0x9a   :  { %v358_v26 = vpop.permute.xlu0 %357 }
  0x9e   :  { %v480_v45 = vpop.permute.xlu0 %479 }
  0xf1   :  { %v570_v52 = vpop.f32.mrb[0].mxu0 }
  0xf2   :  { %v297_v53 = vadd.f32 %v570_v52, %v224_v50  ;;  %v288_v54 = vpop.f32.mrb[1].mxu0 }
  0xf3   :  { %v289_v56 = vadd.f32 %v288_v54, %v214_v51  ;;  %v571_v57 = vpop.f32.mrb[2].mxu0 }
  0xf4   :  { %v300_v59 = vadd.f32 %v571_v57, %v229_v55  ;;  %v291_v60 = vpop.f32.mrb[3].mxu0  ;;  %v305_v62 = vmax.f32 %v297_v53, 0.0 }
  0xf5   :  { %v292_v61 = vadd.f32 %v291_v60, %v219_v58  ;;  %v303_v0 = vmax.f32 %v289_v56, 0.0 }
  0xf6   :  { %v306_v63 = vmax.f32 %v300_v59, 0.0 }
  0xf7   :  { %v304_v1 = vmax.f32 %v292_v61, 0.0 }
  0xf8   :  { %v308_v2 = vpack.c.bf16 %v306_v63, %v305_v62 }
  0xf9   :  { %v307_v3 = vpack.c.bf16 %v304_v1, %v303_v0 }
  0xfb   :  { %572 = vmatprep.subr.bf16.mxu1 %v307_v3 }
  0xfc   :  { %573 = vmatpush3.bf16.msra.mxu1 %v307_v3 }
  0xfd   :  { %574 = vmatprep.subr.bf16.mxu1 %v308_v2 }
 0x100   :  { %575 = vmatpush3.bf16.msra.mxu1 %v308_v2 }
 0x103   :  { %577 = vmatmul.mubr.msk.bf16.vlgmr.msra.gmra.mrb[0].mxu1 %vm385_vm8, %v605_v4 }
 0x104   :  { %580 = vmatprep.mubr.msk.bf16.mxu1 %vm385_vm8, %v606_v5 }
 0x10b   :  { %581 = vmatmul.mubr.msk.bf16.gmra.mrb[4].mxu1 %vm385_vm8, %v607_v6 }
 0x1d6   :  { %v578_v11 = vpop.f32.mrb[0].mxu1 }
 0x1d7   :  { %v441_v12 = vadd.f32 %v578_v11, %v338_v9  ;;  %v432_v13 = vpop.f32.mrb[1].mxu1 }
 0x1d8   :  { %v433_v15 = vadd.f32 %v432_v13, %v328_v7  ;;  %v579_v16 = vpop.f32.mrb[2].mxu1 }
 0x1d9   :  { %v444_v17 = vadd.f32 %v579_v16, %v343_v10  ;;  %v435_v18 = vpop.f32.mrb[3].mxu1  ;;  %v465_v21 = vmax.f32 %v441_v12, 0.0 }
 0x1da   :  { %v436_v20 = vadd.f32 %v435_v18, %v333_v8  ;;  %v463_v23 = vmax.f32 %v433_v15, 0.0 }
 0x1db   :  { %v466_v22 = vmax.f32 %v444_v17, 0.0 }
 0x1dc   :  { %v464_v24 = vmax.f32 %v436_v20, 0.0 }
 0x1dd   :  { %v472_v25 = vpack.c.bf16 %v466_v22, %v465_v21 }
 0x1de   :  { %v471_v27 = vpack.c.bf16 %v464_v24, %v463_v23  ;;  %v582_v28 = vpop.f32.mrb[4].mxu1 }
 0x1df   :  { %v457_v29 = vadd.f32 %v582_v28, %v358_v26  ;;  %v448_v30 = vpop.f32.mrb[5].mxu1 }
 0x1e0   :  { %v449_v32 = vadd.f32 %v448_v30, %v348_v14  ;;  %v583_v33 = vpop.f32.mrb[6].mxu1  ;;  %585 = vmatpush3.bf16.msra.mxu0 %v471_v27 }
 0x1e1   :  { %v460_v35 = vadd.f32 %v583_v33, %v363_v31  ;;  %v451_v36 = vpop.f32.mrb[7].mxu1  ;;  %586 = vmatprep.subr.bf16.mxu0 %v609_v34  ;;  %v469_v38 = vmax.f32 %v457_v29, 0.0 }
 0x1e2   :  { %v452_v37 = vadd.f32 %v451_v36, %v353_v19  ;;  %v467_v40 = vmax.f32 %v449_v32, 0.0 }
 0x1e3   :  { %v470_v39 = vmax.f32 %v460_v35, 0.0 }
 0x1e4   :  { %v468_v41 = vmax.f32 %v452_v37, 0.0  ;;  %587 = vmatpush3.bf16.msra.mxu0 %v472_v25 }
 0x1e5   :  { %v474_v42 = vpack.c.bf16 %v470_v39, %v469_v38  ;;  %588 = vmatprep.subr.bf16.mxu0 %v609_v34 }
 0x1e6   :  { %v473_v43 = vpack.c.bf16 %v468_v41, %v467_v40 }
 0x1e8   :  { %589 = vmatpush3.bf16.msra.mxu0 %v473_v43 }
 0x1e9   :  { %590 = vmatprep.subr.bf16.mxu0 %v609_v34 }
 0x1ec   :  { %591 = vmatpush3.bf16.msra.mxu0 %v474_v42 }
 0x1ef   :  { %593 = vmatmul.mubr.msk.bf16.vlgmr.msra.gmra.mrb[4].mxu0 %vm482_vm10, %v475_v44 }
 0x2c2   :  { %v520_v46 = vpop.f32.mrb[4].mxu0 }
 0x2c3   :  { %v521_v47 = vadd.f32 %v520_v46, %v480_v45  ;;  %v594_v48 = vpop.f32.mrb[5].mxu0 }
 0x2c4   :  { %v523_v49 = vpop.f32.mrb[6].mxu0 }
 0x2c5   :  { %526 = vst [vmem:[%s810_s12] sm:$0xf] %v521_v47  ;;  %v595_v50 = vpop.f32.mrb[7].mxu0 }

</bundles_post_ra>
